<compile_context>
chip_gen: v7x
topology: tpu7x:2x2x1
jax: 0.10.0
libtpu: 0.0.40
codegen_flags: <defaults>
</compile_context>

<pallas_src>
import functools

import jax
import jax.numpy as jnp
from jax.experimental import pallas as pl
from jax.experimental.pallas import tpu as pltpu

_LANE = 128


def _round_up(n, m):
    return -(-n // m) * m


# --------------------------------------------------------------------------
# Kernel
# --------------------------------------------------------------------------
def _attention_kernel(x_ref, w_ref, b_ref, o_ref):
    """One grid step: Bb batch elements of full-sequence attention.

    x_ref: (Bb, S, D)      unpadded input block (D is the full last dim)
    w_ref: (D, 3*Hp)       fused [Wq*scale | Wk | Wv], each slot lane-padded to Hp
    b_ref: (1, 3*Hp)       fused biases (bq pre-scaled)
    o_ref: (Bb, S, H)      unpadded output block
    """
    Bb, S, D = x_ref.shape
    Hp = w_ref.shape[-1] // 3
    H = o_ref.shape[-1]

    # NOTE: this reshape is only free (no VMEM copy) while S % 8 == 0
    # (f32 sublane count); pad S to a multiple of 8 in the wrapper otherwise.
    x2 = x_ref[...].reshape(Bb * S, D)

    # Single fused QKV projection: M = Bb*S rows through the MXU at once.
    # The 1/sqrt(H) scale is already folded into the Q columns of w/b.
    qkv = jnp.dot(x2, w_ref[...], preferred_element_type=jnp.float32) + b_ref[...]
    qkv = qkv.reshape(Bb, S, 3 * Hp)

    # Lane-aligned static slices (Hp is a multiple of 128).
    q = qkv[:, :, :Hp]
    k = qkv[:, :, Hp:2 * Hp]
    v = qkv[:, :, 2 * Hp:]

    # Scores: contraction over the hidden axis expressed directly (no k.T);
    # the zero-padded lanes of q/k contribute exactly zero.
    s = jnp.einsum("bqh,bkh->bqk", q, k, preferred_element_type=jnp.float32)

    # Numerically stable softmax over the key axis (exact reciprocal: 1e-5 tol).
    s = s - jnp.max(s, axis=-1, keepdims=True)
    p = jnp.exp(s)
    p = p * pl.reciprocal(jnp.sum(p, axis=-1, keepdims=True), approx=False)

    out = jnp.einsum("bqk,bkh->bqh", p, v, preferred_element_type=jnp.float32)
    o_ref[...] = out[:, :, :H].astype(o_ref.dtype)


# --------------------------------------------------------------------------
# One-time parameter packing (NOT on the forward hot path)
# --------------------------------------------------------------------------
def prepare_attention_params(wq, wk, wv, bq, bk, bv):
    """Fold the three nn.Linear layers into one lane-padded (D, 3*Hp) weight and
    a (1, 3*Hp) bias, with the 1/sqrt(H) attention scale folded into the Q slot.
    Zero padding is numerically inert (zero weight columns, zero bias).
    Call once at model init and reuse the result on every forward."""
    H, D = wq.shape
    Hp = _round_up(H, _LANE)
    scale = 1.0 / (float(H) ** 0.5)          # torch: / K.size(-1) ** 0.5

    w = jnp.zeros((D, 3 * Hp), jnp.float32)
    w = w.at[:, 0 * Hp:0 * Hp + H].set(wq.T.astype(jnp.float32) * scale)
    w = w.at[:, 1 * Hp:1 * Hp + H].set(wk.T.astype(jnp.float32))
    w = w.at[:, 2 * Hp:2 * Hp + H].set(wv.T.astype(jnp.float32))

    b = jnp.zeros((1, 3 * Hp), jnp.float32)
    b = b.at[0, 0 * Hp:0 * Hp + H].set(bq.astype(jnp.float32) * scale)
    b = b.at[0, 1 * Hp:1 * Hp + H].set(bk.astype(jnp.float32))
    b = b.at[0, 2 * Hp:2 * Hp + H].set(bv.astype(jnp.float32))
    return w, b


def _pick_block_batch(B, S, target_rows=512):
    """Choose batch elements per grid step.
    - Only divisors of B, so no batch padding (no HBM pad op) is ever needed.
    - Target Bb*S ~ 512 rows so the MXU M dimension is well fed.
    - Prefer >= 2 grid steps so v7x's two TensorCores both get work."""
    cap = max(1, target_rows // max(1, S))
    divisors = [d for d in range(1, B + 1) if B % d == 0]
    fits = [d for d in divisors if d <= cap] or [1]
    bb = fits[-1]
    if B // bb < 2:
        two_step = [d for d in fits if B // d >= 2]
        if two_step:
            bb = two_step[-1]
    return bb


# --------------------------------------------------------------------------
# Forward hot path: a single pallas_call, unpadded x / output
# --------------------------------------------------------------------------
def attention_forward(x, w_qkv, b_qkv, hidden_dim):
    """x: (B, S, D); w_qkv/b_qkv from prepare_attention_params; -> (B, S, H)."""
    B, S, D = x.shape
    H = hidden_dim
    Hp3 = w_qkv.shape[-1]
    Bb = _pick_block_batch(B, S)

    grid_spec = pltpu.PrefetchScalarGridSpec(
        num_scalar_prefetch=0,
        grid=(B // Bb,),
        in_specs=[
            pl.BlockSpec((Bb, S, D), lambda b: (b, 0, 0)),    # x (unpadded)
            pl.BlockSpec((D, Hp3), lambda b: (0, 0)),         # fused QKV weight
            pl.BlockSpec((1, Hp3), lambda b: (0, 0)),         # fused bias
        ],
        out_specs=pl.BlockSpec((Bb, S, H), lambda b: (b, 0, 0)),  # out (unpadded)
    )

    return pl.pallas_call(
        _attention_kernel,
        out_shape=jax.ShapeDtypeStruct((B, S, H), jnp.float32),
        grid_spec=grid_spec,
        compiler_params=pltpu.CompilerParams(
            dimension_semantics=("parallel",)),
    )(x.astype(jnp.float32), w_qkv, b_qkv)


# --------------------------------------------------------------------------
# Pure-JAX reference (PyTorch module semantics), pinned to f32 precision
# --------------------------------------------------------------------------
def reference_forward(x, wq, wk, wv, bq, bk, bv):
    hi = jax.lax.Precision.HIGHEST
    Q = jnp.einsum("bsd,hd->bsh", x, wq, precision=hi) + bq
    K = jnp.einsum("bsd,hd->bsh", x, wk, precision=hi) + bk
    V = jnp.einsum("bsd,hd->bsh", x, wv, precision=hi) + bv
    scores = jnp.einsum("bqh,bkh->bqk", Q, K, precision=hi) / (K.shape[-1] ** 0.5)
    w = jax.nn.softmax(scores, axis=-1)
    return jnp.einsum("bqk,bkh->bqh", w, V, precision=hi)


if __name__ == "__main__":
    # Small shapes consistent with the module: batch=2, seq=8,
    # input_dim=32, hidden_dim=32.
    B, S, D_in, H = 2, 8, 32, 32

    key = jax.random.PRNGKey(0)
    kx, kq, kk, kv, kbq, kbk, kbv = jax.random.split(key, 7)

    x = jax.random.normal(kx, (B, S, D_in), dtype=jnp.float32)

    # Deterministic synthetic parameter init (PyTorch Linear layout: (out, in)).
    init_scale = 1.0 / (D_in ** 0.5)
    wq = jax.random.uniform(kq, (H, D_in), minval=-init_scale, maxval=init_scale,
                            dtype=jnp.float32)
    wk = jax.random.uniform(kk, (H, D_in), minval=-init_scale, maxval=init_scale,
                            dtype=jnp.float32)
    wv = jax.random.uniform(kv, (H, D_in), minval=-init_scale, maxval=init_scale,
                            dtype=jnp.float32)
    bq = jax.random.uniform(kbq, (H,), minval=-init_scale, maxval=init_scale,
                            dtype=jnp.float32)
    bk = jax.random.uniform(kbk, (H,), minval=-init_scale, maxval=init_scale,
                            dtype=jnp.float32)
    bv = jax.random.uniform(kbv, (H,), minval=-init_scale, maxval=init_scale,
                            dtype=jnp.float32)

    # One-time packing (init-time; NOT on the per-call hot path).
    w_qkv, b_qkv = prepare_attention_params(wq, wk, wv, bq, bk, bv)
    w_qkv, b_qkv = jax.block_until_ready((w_qkv, b_qkv))

    # Hot path: single pallas_call.
    fwd = jax.jit(functools.partial(attention_forward, hidden_dim=H))
    out = fwd(x, w_qkv, b_qkv)
    out = jax.block_until_ready(out)

    ref = reference_forward(x, wq, wk, wv, bq, bk, bv)
    assert out.shape == (B, S, H), out.shape
    assert jnp.allclose(out, ref, atol=1e-5, rtol=1e-5), \
        float(jnp.max(jnp.abs(out - ref)))

    print("KERNEL_OK")
</pallas_src>

<mosaic_0001>
module attributes {stable_mosaic.version = 11 : i64} {
  func.func @_attention_kernel(%arg0: i32, %arg1: memref<1x8x32xf32, #tpu.memory_space<vmem>>, %arg2: memref<32x384xf32, #tpu.memory_space<vmem>>, %arg3: memref<1x384xf32, #tpu.memory_space<vmem>>, %arg4: memref<1x8x32xf32, #tpu.memory_space<vmem>>) attributes {dimension_semantics = [#tpu.dimension_semantics<parallel>], iteration_bounds = array<i64: 2>, scalar_prefetch = 0 : i64, scratch_operands = 0 : i64, tpu.core_type = #tpu.core_type<tc>, window_params = [{transform_indices = @transform_0, window_bounds = array<i64: 1, 8, 32>}, {pipeline_mode = #tpu.pipeline_mode<synchronous>, transform_indices = @transform_1, window_bounds = array<i64: 32, 384>}, {pipeline_mode = #tpu.pipeline_mode<synchronous>, transform_indices = @transform_2, window_bounds = array<i64: 1, 384>}, {transform_indices = @transform_3, window_bounds = array<i64: 1, 8, 32>}]} {
    %c0 = arith.constant 0 : index
    %c0_0 = arith.constant 0 : index
    %c0_1 = arith.constant 0 : index
    %0 = vector.load %arg1[%c0, %c0_0, %c0_1] : memref<1x8x32xf32, #tpu.memory_space<vmem>>, vector<1x8x32xf32>
    %1 = vector.shape_cast %0 : vector<1x8x32xf32> to vector<8x32xf32>
    %c0_2 = arith.constant 0 : index
    %c0_3 = arith.constant 0 : index
    %2 = vector.load %arg2[%c0_2, %c0_3] : memref<32x384xf32, #tpu.memory_space<vmem>>, vector<32x384xf32>
    %cst = arith.constant dense<0.000000e+00> : vector<8x384xf32>
    %3 = tpu.matmul %1, %2, %cst {dimension_numbers = #tpu.dot_dimension_numbers<[1], [0], [0], [1], [0, 0, 1, 1], [], []>} : vector<8x32xf32>, vector<32x384xf32>, vector<8x384xf32> -> vector<8x384xf32>
    %c0_4 = arith.constant 0 : index
    %c0_5 = arith.constant 0 : index
    %4 = vector.load %arg3[%c0_4, %c0_5] : memref<1x384xf32, #tpu.memory_space<vmem>>, vector<1x384xf32>
    %5 = vector.broadcast %4 : vector<1x384xf32> to vector<8x384xf32>
    %6 = arith.addf %3, %5 : vector<8x384xf32>
    %7 = vector.shape_cast %6 : vector<8x384xf32> to vector<1x8x384xf32>
    %8 = vector.extract_strided_slice %7 {offsets = [0, 0, 0], sizes = [1, 8, 128], strides = [1, 1, 1]} : vector<1x8x384xf32> to vector<1x8x128xf32>
    %9 = vector.extract_strided_slice %7 {offsets = [0, 0, 128], sizes = [1, 8, 128], strides = [1, 1, 1]} : vector<1x8x384xf32> to vector<1x8x128xf32>
    %10 = vector.extract_strided_slice %7 {offsets = [0, 0, 256], sizes = [1, 8, 128], strides = [1, 1, 1]} : vector<1x8x384xf32> to vector<1x8x128xf32>
    "tpu.trace_start"() <{level = 10 : i32, message = "bqh,bkh->bqk"}> : () -> ()
    %cst_6 = arith.constant dense<0.000000e+00> : vector<1x8x8xf32>
    %11 = tpu.matmul %8, %9, %cst_6 {dimension_numbers = #tpu.dot_dimension_numbers<[2], [2], [1], [1], [0, 0, 0, 1, 1, 1], [0], [0]>} : vector<1x8x128xf32>, vector<1x8x128xf32>, vector<1x8x8xf32> -> vector<1x8x8xf32>
    "tpu.trace_stop"() : () -> ()
    %cst_7 = arith.constant dense<0xFF800000> : vector<1x8xf32>
    %12 = vector.multi_reduction <maximumf>, %11, %cst_7 [2] : vector<1x8x8xf32> to vector<1x8xf32>
    %13 = vector.shape_cast %12 : vector<1x8xf32> to vector<1x8x1xf32>
    %14 = vector.broadcast %13 : vector<1x8x1xf32> to vector<1x8x8xf32>
    %15 = arith.subf %11, %14 : vector<1x8x8xf32>
    %16 = math.exp %15 : vector<1x8x8xf32>
    %cst_8 = arith.constant dense<0.000000e+00> : vector<1x8xf32>
    %17 = vector.multi_reduction <add>, %16, %cst_8 [2] : vector<1x8x8xf32> to vector<1x8xf32>
    %18 = vector.shape_cast %17 : vector<1x8xf32> to vector<1x8x1xf32>
    %19 = tpu.reciprocal %18 : vector<1x8x1xf32> -> vector<1x8x1xf32>
    %20 = vector.broadcast %19 : vector<1x8x1xf32> to vector<1x8x8xf32>
    %21 = arith.mulf %16, %20 : vector<1x8x8xf32>
    "tpu.trace_start"() <{level = 10 : i32, message = "bqk,bkh->bqh"}> : () -> ()
    %cst_9 = arith.constant dense<0.000000e+00> : vector<1x8x128xf32>
    %22 = tpu.matmul %21, %10, %cst_9 {dimension_numbers = #tpu.dot_dimension_numbers<[2], [1], [1], [2], [0, 0, 0, 1, 1, 2], [0], [0]>} : vector<1x8x8xf32>, vector<1x8x128xf32>, vector<1x8x128xf32> -> vector<1x8x128xf32>
    "tpu.trace_stop"() : () -> ()
    %23 = vector.extract_strided_slice %22 {offsets = [0, 0, 0], sizes = [1, 8, 32], strides = [1, 1, 1]} : vector<1x8x128xf32> to vector<1x8x32xf32>
    %c0_10 = arith.constant 0 : index
    %c0_11 = arith.constant 0 : index
    %c0_12 = arith.constant 0 : index
    %24 = vector.load %arg4[%c0_10, %c0_11, %c0_12] : memref<1x8x32xf32, #tpu.memory_space<vmem>>, vector<1x8x32xf32>
    tpu.vector_store %arg4[%c0_10, %c0_11, %c0_12], %23 {strides = array<i32>} : memref<1x8x32xf32, #tpu.memory_space<vmem>>, vector<1x8x32xf32>,
    return
  }
  func.func @transform_0(%arg0: i32) -> (i32, i32, i32) {
    %c0_i32 = arith.constant 0 : i32
    %c0_i32_0 = arith.constant 0 : i32
    %c0_i32_1 = arith.constant 0 : i32
    return %arg0, %c0_i32, %c0_i32_0 : i32, i32, i32
  }
  func.func @transform_1(%arg0: i32) -> (i32, i32) {
    %c0_i32 = arith.constant 0 : i32
    %c0_i32_0 = arith.constant 0 : i32
    %c0_i32_1 = arith.constant 0 : i32
    return %c0_i32, %c0_i32_0 : i32, i32
  }
  func.func @transform_2(%arg0: i32) -> (i32, i32) {
    %c0_i32 = arith.constant 0 : i32
    %c0_i32_0 = arith.constant 0 : i32
    %c0_i32_1 = arith.constant 0 : i32
    return %c0_i32, %c0_i32_0 : i32, i32
  }
  func.func @transform_3(%arg0: i32) -> (i32, i32, i32) {
    %c0_i32 = arith.constant 0 : i32
    %c0_i32_0 = arith.constant 0 : i32
    %c0_i32_1 = arith.constant 0 : i32
    return %arg0, %c0_i32, %c0_i32_0 : i32, i32, i32
  }
}

</mosaic_0001>

<bundles_post_ra>
// kernel: attention_forward.1
= control target key start
LH: loop header
LB: loop body
LE: loop exit
PB: predicated region body
PF: predicated region fallthrough
CT: control target
= control target key end

     0   :  { %8 = vsyncpa [#allocation3], 0  ;;  %s1123_s0 = inlined_call_operand.hbm [shape: f32[2,8,32], index: 0, kind: input, shape index: {}]   ;;  %s1124_s1 = inlined_call_operand.hbm [shape: f32[32,384], index: 1, kind: input, shape index: {}]   ;;  %s1125_s2 = inlined_call_operand.vmem [shape: f32[1,384], index: 2, kind: input, shape index: {}]   ;;  %s1126_s3 = inlined_call_operand.hbm [shape: f32[2,8,32], index: 3, kind: output, shape index: {}]  }
   0x1   :  { %10 = vsyncpa [#allocation3 + $0x1], 0 }
   0x2   :  { %11 = vsyncpa [#allocation6], 0 }
   0x3   :  { %12 = vsyncpa [#allocation4], 0 }
   0x4   :  { %14 = vsyncpa [#allocation4 + $0x1], 0  ;;  %s911_s12 = smov 0   ;;  %s913_s13 = smov 0  }
   0x5   :  { %s915_s14 = smov 0   ;;  %s917_s15 = smov 0  }
   0x6 LB: > { %s932_s16 = sadd.s32 4294967295, %s881_s15   ;;  %s626_s17 = sadd.s32 4294967294, %s881_s15   ;;  %s881_s15 = sphi %s917_s15, %s1146_s15   ;;  %s877_s14 = sphi %s915_s14, %s1145_s14   ;;  %s873_s13 = sphi %s913_s13, %s1144_s13   ;;  %s869_s12 = sphi %s911_s12, %s1143_s12  }
   0x7   : > { %p40_p0 = scmp.ne.s32.totalorder %s873_s13, %s869_s12  ;;  %p1127_p1 = scmp.eq.s32.totalorder %s932_s16, 0 }
   0x8   : > { %p112_p3 = scmp.eq.s32.totalorder %s626_s17, 1  ;;  %p627_p5 = scmp.ge.s32.totalorder %s881_s15, 1 }
   0x9   : > { %p941_p4 = por %p1127_p1, %p40_p0  ;;  %p119_p7 = scmp.lt.s32.totalorder %s881_s15, 3 }
   0xa   : > { %p946_p6 = por %p112_p3, %p40_p0  ;;  %s883_s21 = smov [#allocation5]  }
   0xb   : > { %s1130_s18 = scalar_select %p941_p4, 1, 0 }
   0xc   : > { %s1131_s19 = scalar_select %p946_p6, 1, 0 }
   0xd   : > { %p951_p8 = pnand %p627_p5, %p119_p7  ;;  %s131_s22 = sshll.u32 %s883_s21, 4  ;;  %s955_s22 = int_to_ptr.vmem [resolvable:$true] %s131_s22 }
   0xe   : > { %s967_s24 = sadd.s32 1, %s881_s15   ;;  %s27_s25 = sadd.s32 1, %s877_s14 }
   0xf   : > { %s1132_s20 = scalar_select %p951_p8, 1, 0 }
  0x10   : > { %p695_p9 = pneg %p951_p8  ;;  %s24_s26 = ssub.s32 %s881_s15, %s967_s24 }
  0x11   : > { %s753_s29 = scalar_lea.hbm %s1124_s1, 1536 }
  0x12   : > { %p962_p11 = pnand %p695_p9, %p1127_p1  ;;  %p754_p12 = scmp.ne.s32.totalorder %s1124_s1, %s753_s29 }
  0x13   : > { %p760_p5 = scmp.lt.u32.totalorder %s753_s29, %s1124_s1 }
  0x14   : > { %p755_p13 = pneg %p962_p11 }
  0x16   : > { %p756_p0 = pnand %p755_p13, %p754_p12 }
  0x18   : > { %p757_p3 = pneg %p756_p0 }
  0x1a   : > { %p762_p7 = pnand %p760_p5, %p757_p3 }
  0x1c   : > { %765 = shalt.err (!%p762_p7)
}
  0x1d   : > { %s766_s7 = scalar_lea.vmem %s955_s22, 1536  ;;  %p774_p2 = scmp.lt.s32.totalorder %s955_s22, %s955_s22 }
  0x1e   : > { %p767_p9 = scmp.ne.s32.totalorder %s955_s22, %s766_s7  ;;  %p775_p6 = scmp.lt.s32.totalorder %s766_s7, %s766_s7 }
  0x20   : > { %p769_p10 = pnand %p767_p9, %p755_p13  ;;  %p776_p4 = por %p775_p6, %p774_p2 }
  0x22   : > { %p770_p1 = pneg %p769_p10 }
  0x24   : > { %p777_p8 = pnand %p776_p4, %p770_p1 }
  0x26   : > { %780 = shalt.err (!%p777_p8)
}
  0x27   : > { %s884_s8 = smov 384   ;;  %s885_s9 = smov 24  }
  0x28   : > { %698 = dma.hbm_to_vmem [thread:$0]  (!%p962_p11), %s1124_s1, 1536, %s955_s22, [#allocation6], %s884_s8, %s884_s8, %s885_s9  }
  0x29   : > { %p25_p2 = scmp.eq.s32.totalorder %s24_s26, 0  ;;  %p34_p1 = scmp.ne.s32.totalorder %s877_s14, %s873_s13 }
  0x2a   : > { %p35_p4 = scmp.eq.s32.totalorder %s881_s15, 0  ;;  %p708_p6 = scmp.lt.s32.totalorder %s881_s15, 2 }
  0x2b   : > { %s998_s17 = scalar_select %p25_p2, %s877_s14, %s27_s25  }
  0x2c   : > { %p36_p8 = por %p35_p4, %p34_p1  ;;  %p1134_p10 = scmp.eq.s32.totalorder %s932_s16, 1 }
  0x2d   : > { %s148_s27 = sand.u32 1, %s877_s14   ;;  %s631_s28 = sshll.u32 %s881_s15, 7 }
  0x2e   : > { %p1002_p12 = por %p1134_p10, %p34_p1  ;;  %s630_s29 = sshll.u32 %s148_s27, 3 }
  0x2f   : > { %s1011_s4 = scalar_lea.hbm %s1123_s0, %s631_s28  ;;  %s152_s22 = scalar_lea.vmem [#allocation2], %s630_s29 }
  0x30   : > { %s159_s25 = sshll.u32 %s152_s22, 4  ;;  %p1013_p11 = pnand %p708_p6, %p36_p8  ;;  %s1017_s25 = int_to_ptr.vmem [resolvable:$true] %s159_s25 }
  0x31   : > { %s149_s5 = scalar_lea.sflag [#allocation3], %s148_s27  ;;  %s781_s6 = scalar_lea.hbm %s1011_s4, 128 }
  0x32   : > { %p782_p13 = scmp.ne.s32.totalorder %s1011_s4, %s781_s6  ;;  %p783_p0 = pneg %p1013_p11 }
  0x33   : > { %s786_s9 = scalar_lea.hbm %s1123_s0, 256  ;;  %p787_p7 = scmp.lt.u32.totalorder %s1011_s4, %s1123_s0 }
  0x34   : > { %p784_p3 = pnand %p783_p0, %p782_p13  ;;  %p788_p9 = scmp.lt.u32.totalorder %s786_s9, %s781_s6 }
  0x35   : > { %p790_p1 = scmp.lt.u32.totalorder %s781_s6, %s1011_s4 }
  0x36   : > { %p785_p5 = pneg %p784_p3  ;;  %p789_p2 = por %p788_p9, %p787_p7 }
  0x38   : > { %p791_p4 = por %p790_p1, %p789_p2 }
  0x3a   : > { %p792_p6 = pnand %p791_p4, %p785_p5 }
  0x3c   : > { %795 = shalt.err (!%p792_p6)
}
  0x3d   : > { %s796_s27 = scalar_lea.vmem %s1017_s25, 128  ;;  %s886_s28 = smov [#allocation2]  }
  0x3e   : > { %p797_p8 = scmp.ne.s32.totalorder %s1017_s25, %s796_s27  ;;  %s801_s29 = sshll.u32 %s886_s28, 4  ;;  %s802_s29 = int_to_ptr.vmem [resolvable:$false] %s801_s29 }
  0x3f   : > { %s803_s23 = scalar_lea.vmem %s802_s29, 256  ;;  %p804_p3 = scmp.lt.s32.totalorder %s1017_s25, %s802_s29 }
  0x40   : > { %p799_p10 = pnand %p797_p8, %p783_p0  ;;  %p805_p7 = scmp.lt.s32.totalorder %s803_s23, %s796_s27 }
  0x42   : > { %p800_p13 = pneg %p799_p10  ;;  %p806_p9 = por %p805_p7, %p804_p3 }
  0x44   : > { %p807_p2 = pnand %p806_p9, %p800_p13 }
  0x46   : > { %810 = shalt.err (!%p807_p2)
}
  0x47   : > { %702 = dma.hbm_to_vmem [thread:$0]  (!%p1013_p11), %s1011_s4, 128, %s1017_s25, %s149_s5  }
  0x48   : > { %p1137_p5 = scmp.ne.s32.totalorder %s1132_s20, 0 }
  0x49   : > { %s1047_s30 = sand.u32 (!%p1137_p5), 1, %s873_s13   ;;  %p1138_p0 = scmp.ne.s32.totalorder (!%p1137_p5), %s1130_s18, 0 }
  0x4a   : > { %168 = sbr.rel (%p1137_p5) target bundleno = 1066 (0x42a), region = 32  ;;  %s633_s22 = sshll.u32 (!%p1137_p5), %s1047_s30, 3 }
  0x4b   : > { %s171_s6 = scalar_lea.sflag (!%p1137_p5), [#allocation3], %s1047_s30  ;;  %s174_s7 = scalar_lea.vmem (!%p1137_p5), [#allocation2], %s633_s22 }
  0x51   : > { %856 = dma.done.wait (%p1138_p0), %s171_s6, 128  }
  0x52   : > { %858 = vsyncadd (%p1138_p0), %s171_s6, 4294967168  ;;  %p1139_p11 = scmp.eq.s32.totalorder %s932_s16, 0 }
  0x54   : > { %860 = dma.done.wait (%p1139_p11), [#allocation6], 1536   ;;  %p1140_p1 = pmov %p1139_p11 }
  0x55   : > { %v887_v0 = vmov 0.0   ;;  %v203_v1 = vld [vmem:[#allocation5 + $0x8] sm:$0xff]  ;;  %v206_v2 = vld [vmem:[#allocation5 + $0x20] sm:$0xff]  ;;  %v205_v5 = vld [vmem:[#allocation5 + $0x18] sm:$0xff]  ;;  %vm231_vm0 = vcmask 261120   ;;  %vm888_vm1 = vmmov 0   ;;  %v216_v14 = vlaneseq }
  0x56   : > { %862 = vsyncadd (%p1140_p1), [#allocation6], 4294965760  ;;  %299 = vmatprep.mubr.f32.mxu0 %v887_v0  ;;  %v202_v3 = vld [vmem:[#allocation5] sm:$0xff]  ;;  %v673_v4 = vpack.c.bf16 %v206_v2, %v203_v1  ;;  %v209_v6 = vld [vmem:[#allocation5 + $0x38] sm:$0xff]  ;;  %660 = vmatprep.mubr.msk.f32.mxu1 %vm888_vm1, %v887_v0  ;;  %v889_v28 = vmov 0.0|0.0   ;;  %vm446_vm2 = vcmask 64512  }
  0x57   : > { %v212_v7 = vld [vmem:[#allocation5 + $0x50] sm:$0xff]  ;;  %v675_v8 = vpack.c.bf16 %v205_v5, %v202_v3  ;;  %v211_v11 = vld [vmem:[#allocation5 + $0x48] sm:$0xff]  ;;  %v217_v15 = vshrl.u32 %v216_v14, 7  ;;  %v210_v27 = vld [vmem:[#allocation5 + $0x40] sm:$0xff]  ;;  %681 = vmatprep.subr.bf16.mxu1 %v889_v28  ;;  %s640_s4 = sshll.u32 %s932_s16, 7  ;;  %s200_s25 = scalar_lea.vmem [#allocation7], %s633_s22 }
  0x58   : > { %v677_v9 = vpack.c.bf16 %v212_v7, %v209_v6  ;;  %v208_v10 = vld [vmem:[#allocation5 + $0x30] sm:$0xff]  ;;  %674 = vmatprep.subr.bf16.mxu0 %v673_v4  ;;  %v207_v26 = vld [vmem:[#allocation5 + $0x28] sm:$0xff]  ;;  %v213_v30 = vld [vmem:[#allocation5 + $0x58] sm:$0xff]  ;;  %s546_s26 = sshll.u32 %s200_s25, 4  ;;  %s1078_s9 = scalar_lea.hbm %s1126_s3, %s640_s4  ;;  %s1080_s26 = int_to_ptr.vmem [resolvable:$true] %s546_s26 }
  0x59   : > { %676 = vmatpush1.bf16.msra.mxu0 %v675_v8  ;;  %v679_v12 = vpack.c.bf16 %v211_v11, %v208_v10  ;;  %v201_v13 = vld [vmem:[%s174_s7] sm:$0xff]  ;;  %v222_v16 = vsub.s32 1, %v217_v15  ;;  %v218_v18 = vsub.s32 0, %v217_v15  ;;  %v685_v31 = vpack.c.bf16 %v213_v30, %v210_v27  ;;  %s533_s10 = scalar_lea.sflag [#allocation4], %s1047_s30  ;;  %s811_s11 = scalar_lea.vmem %s1080_s26, 128 }
  0x5a   : > { %678 = vmatprep.subr.bf16.mxu0 %v677_v9  ;;  %v214_v17 = vld [vmem:[%s1125_s2] sm:$0x7]  ;;  %v226_v40 = vsub.s32 2, %v217_v15  ;;  %p812_p4 = scmp.ne.s32.totalorder %s1080_s26, %s811_s11  ;;  %s890_s16 = smov [#allocation7]  }
  0x5b   : > { %v223_v19 = vrot.slane %v214_v17, %v222_v16  ;;  %v219_v21 = vrot.slane %v214_v17, %v218_v18  ;;  %v204_v25 = vld [vmem:[#allocation5 + $0x10] sm:$0xff]  ;;  %s815_s27 = sshll.u32 %s890_s16, 4  ;;  %s816_s27 = int_to_ptr.vmem [resolvable:$false] %s815_s27 }
  0x5c   : > { %v682_v29 = vpack.c.bf16 %v207_v26, %v204_v25  ;;  %v227_v41 = vrot.slane %v214_v17, %v226_v40  ;;  %p813_p6 = pnand %p812_p4, %p1002_p12  ;;  %s817_s28 = scalar_lea.vmem %s816_s27, 256 }
  0x5d   : > { %680 = vmatpush1.bf16.msra.mxu0 %v679_v12  ;;  %p818_p10 = scmp.lt.s32.totalorder %s1080_s26, %s816_s27  ;;  %p819_p13 = scmp.lt.s32.totalorder %s817_s28, %s811_s11 }
  0x5e   : > { %663 = vmatprep.subr.mxu0 %v887_v0  ;;  %683 = vmatpush3.bf16.msra.mxu1 %v682_v29  ;;  %p814_p8 = pneg %p813_p6 }
  0x5f   : > { %684 = vmatprep.subr.bf16.mxu1 %v889_v28  ;;  %p820_p3 = por %p819_p13, %p818_p10 }
  0x60   : > { %636 = vmatmul.mubr.msk.f32.vlgmr.msra.gmra.mrb[0].mxu0 %vm231_vm0, %v201_v13 }
  0x61   : > { %665 = vmatprep.mubr.msk.f32.mxu0 %vm888_vm1, %v887_v0  ;;  %p821_p7 = pnand %p820_p3, %p814_p8 }
  0x62   : > { %686 = vmatpush3.bf16.msra.mxu1 %v685_v31 }
  0x63   : > { %668 = vmatprep.subr.mxu1 %v887_v0 }
  0x65   : > { %661 = vmatmul.mubr.msk.f32.vlgmr.msra.gmra.mrb[0].mxu1 %vm231_vm0, %v201_v13 }
  0x66   : > { %670 = vmatprep.mubr.msk.f32.mxu1 %vm888_vm1, %v887_v0 }
 0x133   : > { %v301_v20 = vpop.f32.mrb[0].mxu0 }
 0x134   : > { %v303_v22 = vpop.f32.mrb[1].mxu0  ;;  %v302_v24 = vadd.f32 %v301_v20, %v219_v21 }
 0x135   : > { %v304_v23 = vadd.f32 %v303_v22, %v223_v19 }
 0x137   : > { %664 = vmatpush3.xpose.msra.mxu0 %v304_v23 }
 0x138   : > { %v372_v42 = vpop.f32.mrb[0].mxu1 }
 0x139   : > { %v662_v43 = vpop.f32.mrb[1].mxu1  ;;  %v373_v44 = vadd.f32 %v372_v42, %v227_v41 }
 0x13a   : > { %666 = vmatmul.mubr.f32.vlgmr.msra.gmra.mrb[2].mxu0 %v302_v24 }
 0x13b   : > { %669 = vmatpush3.msra.mxu1 %v373_v44 }
 0x20d   : > { %v442_v32 = vpop.f32.mrb[2].mxu0 }
 0x20e   : > { %v667_v33 = vpop.f32.mrb[3].mxu0  ;;  %v447_v34 = vsel %vm446_vm2, %v442_v32, -inf }
 0x20f   : > { %448 = vmax.xlane.f32.xlu0 %v447_v34 }
 0x29c   : > { %v449_v35 = vpop.xlane.xlu0 %448 }
 0x29d   : > { %v450_v36 = vsub.f32 %v442_v32, %v449_v35 }
 0x29f   : > { %v451_v37 = vmul.f32 1.442695, %v450_v36 }
 0x2a1   : > { %749 = vpow2.f32 %v451_v37 }
 0x2ab   : > { %v750_v38 = vpop.eup %749 }
 0x2ac   : > { %v453_v39 = vsel %vm446_vm2, %v750_v38, 0.0 }
 0x2ad   : > { %454 = vadd.xlane.f32.xlu0 %v453_v39 }
 0x33a   : > { %v455_v45 = vpop.xlane.xlu0 %454 }
 0x33b   : > { %751 = vrcp.f32 %v455_v45 }
 0x345   : > { %v752_v46 = vpop.eup %751 }
 0x346   : > { %v457_v47 = vmul.f32 %v752_v46, %v750_v38 }
 0x348   : > { %671 = vmatmul.mubr.msk.f32.vlgmr.msra.gmra.mrb[2].mxu1 %vm446_vm2, %v457_v47 }
 0x41b   : > { %v527_v48 = vpop.f32.mrb[2].mxu1 }
 0x41c   : > { %531 = vst.msk [vmem:[%s200_s25] sm:$0xff] %vm231_vm0, %v527_v48  ;;  %v672_v49 = vpop.f32.mrb[3].mxu1 }
 0x41d   : > { %824 = shalt.err (!%p821_p7)
}
 0x41e   : > { %s825_s29 = scalar_lea.hbm %s1078_s9, 128  ;;  %s829_s22 = scalar_lea.hbm %s1126_s3, 256 }
 0x41f   : > { %p826_p9 = scmp.ne.s32.totalorder %s1078_s9, %s825_s29  ;;  %p830_p0 = scmp.lt.u32.totalorder %s1078_s9, %s1126_s3 }
 0x420   : > { %p831_p11 = scmp.lt.u32.totalorder %s829_s22, %s825_s29  ;;  %p833_p4 = scmp.lt.u32.totalorder %s825_s29, %s1078_s9 }
 0x421   : > { %p827_p2 = pnand %p826_p9, %p1002_p12 }
 0x422   : > { %p832_p1 = por %p831_p11, %p830_p0 }
 0x423   : > { %p828_p5 = pneg %p827_p2 }
 0x424   : > { %p834_p6 = por %p833_p4, %p832_p1 }
 0x426   : > { %p835_p8 = pnand %p834_p6, %p828_p5 }
 0x428   : > { %838 = shalt.err (!%p835_p8)
}
 0x429   : > { %693 = dma.vmem_to_hbm [thread:$0]  (%p1002_p12), %s1080_s26, 128, %s1078_s9, %s533_s10  }
 0x42a PF: > { %s558_s18 = sand.u32 1, %s869_s12   ;;  %p1141_p10 = scmp.ne.s32.totalorder %s1131_s19, 0 }
 0x42b   : > { %p1142_p13 = scmp.ge.s32.totalorder %s881_s15, 2  ;;  %s559_s20 = scalar_lea.sflag [#allocation4], %s558_s18 }
 0x42d   : > { %p704_p3 = pnand %p1142_p13, %p1141_p10 }
 0x42f   : > { %864 = dma.done.wait (!%p704_p3), %s559_s20, 128  }
 0x430   : > { %866 = vsyncadd (!%p704_p3), %s559_s20, 4294967168  ;;  %p17_p7 = scmp.ge.s32.totalorder %s967_s24, 4   ;;  %s1143_s12 = smov %s873_s13 }
 0x431   : > { %s1144_s13 = smov %s877_s14  ;;  %s1145_s14 = smov %s998_s17 }
 0x432   : > { %s1146_s15 = smov %s967_s24  ;;  %19 = sbr.rel (!%p17_p7) target bundleno = 6 (0x6), region = 81 }
 0x439   :  { %564 = vsyncpa [#allocation3], 1 }
 0x43a   :  { %566 = vsyncpa [#allocation3 + $0x1], 1 }
 0x43b   :  { %567 = vsyncpa [#allocation6], 1 }
 0x43c   :  { %568 = vsyncpa [#allocation4], 1 }
 0x43d   :  { %570 = vsyncpa [#allocation4 + $0x1], 1 }

</bundles_post_ra>
